<compile_context>
chip_gen: v5e
topology: v5e:2x2
jax: 0.10.0
libtpu: 0.0.40
codegen_flags: <defaults>
</compile_context>

<pallas_src>
import jax
import jax.numpy as jnp
from jax.experimental import pallas as pl
from jax.experimental.pallas import tpu as pltpu


# ----------------------------- Pallas kernel ------------------------------ #
def _oab_kernel(x_ref, pc_ref, pr_ref,
                wp1_ref, bp1_ref, wp2_ref, bp2_ref,   # f_pixel  (2x conv+bn+relu), col layout
                wo1_ref, bo1_ref, wo2_ref, bo2_ref,   # f_object (2x conv+bn+relu), row layout
                wd_ref, bd_ref,                       # f_down   (conv+bn+relu),    col layout
                wu_ref, bu_ref,                       # f_up     (conv+bn+relu),    col layout
                out_ref):
    cdt = x_ref.dtype  # compute dtype fed to the MXU (bf16 by default)

    def cbr_cols(a, w_ref, b_ref):
        # relu(W @ a + b): a (Cin, T), W (Cout, Cin), b (Cout, 1) -> f32 (Cout, T)
        y = jnp.dot(w_ref[...], a, preferred_element_type=jnp.float32)
        return jnp.maximum(y + b_ref[...], 0.0)

    def cbr_rows(a, w_ref, b_ref):
        # relu(a @ W + b): a (T, Cin), W (Cin, Cout), b (1, Cout) -> f32 (T, Cout)
        y = jnp.dot(a, w_ref[...], preferred_element_type=jnp.float32)
        return jnp.maximum(y + b_ref[...], 0.0)

    x = x_ref[...]     # (C, TQ)  query pixels, lane-dense over TQ
    pc = pc_ref[...]   # (C, M)   proxy, column layout (for value)
    pr = pr_ref[...]   # (M, C)   proxy, row layout    (for key)

    # f_pixel -> query (Kc, TQ); the kc**-0.5 scale is pre-folded into wp2/bp2.
    q = cbr_cols(cbr_cols(x, wp1_ref, bp1_ref).astype(cdt), wp2_ref, bp2_ref)
    # f_object -> key (M, Kc)
    k = cbr_rows(cbr_rows(pr, wo1_ref, bo1_ref).astype(cdt), wo2_ref, bo2_ref)
    # f_down -> value (Kc, M)
    v = cbr_cols(pc, wd_ref, bd_ref)

    # Attention: keep the tiny proxy axis M on sublanes so the lane dim (TQ)
    # stays dense.  sim / attn are (M, TQ); softmax reduces over axis 0.
    sim = jnp.dot(k.astype(cdt), q.astype(cdt), preferred_element_type=jnp.float32)
    sim = sim - jnp.max(sim, axis=0, keepdims=True)
    e = jnp.exp(sim)
    attn = e * pl.reciprocal(jnp.sum(e, axis=0, keepdims=True), approx=True)

    # context (Kc, TQ) = V @ attn, then f_up -> (C, TQ)
    ctx = jnp.dot(v.astype(cdt), attn.astype(cdt), preferred_element_type=jnp.float32)
    out = cbr_cols(ctx.astype(cdt), wu_ref, bu_ref)
    out_ref[...] = out.astype(out_ref.dtype)          # lane-dense store over TQ


# ------------------------------ JAX wrapper -------------------------------- #
def _vmem_limit_bytes():
    """Scoped-VMEM limit sized per TPU generation (v7x has only 64 MiB physical)."""
    cap = 64 * 1024 * 1024
    try:
        cap = int(getattr(pltpu.get_tpu_info(), "vmem_capacity_bytes", cap))
    except Exception:
        pass
    return max(32 * 1024 * 1024, min((cap * 3) // 4, 100 * 1024 * 1024))


def object_attention_block(x_nchw, proxy_nchw, params, *, tile_q=512,
                           compute_dtype=jnp.bfloat16):
    """x: (N, C, H, W), proxy: (N, C, Hp, Wp). Returns (N, C, H, W).

    `tile_q` is the pixel-tile size (rounded to a multiple of 128).  At real
    OCRNet sizes use ~512-1024 (re-derive against 64 MiB VMEM on v7x).
    `compute_dtype=jnp.float32` recovers near-exact numerics if needed.
    """
    n, c, h, w = x_nchw.shape
    _, _, hp, wp_ = proxy_nchw.shape
    hw, m = h * w, hp * wp_
    out_dtype = x_nchw.dtype

    # NCHW -> (N, C, HW): pure reshapes, no HBM transpose round trips.
    x = x_nchw.reshape(n, c, hw).astype(compute_dtype)
    p_cols = proxy_nchw.reshape(n, c, m).astype(compute_dtype)       # (N, C, M)
    p_rows = jnp.swapaxes(p_cols, 1, 2)                              # (N, M, C) -- tiny

    (wp1, bp1), (wp2, bp2) = params["f_pixel"]
    (wo1, bo1), (wo2, bo2) = params["f_object"]
    (wd, bd), = params["f_down"]
    (wu, bu), = params["f_up"]
    kc = wp1.shape[1]

    # Fold the kc**-0.5 attention scale into f_pixel's second conv+BN
    # (ReLU is positive-homogeneous, scale > 0 => exactly equivalent).
    scale = kc ** (-0.5)
    wp2 = wp2 * scale
    bp2 = bp2 * scale

    def w_col(wmat):   # (Cin, Cout) -> (Cout, Cin) for y = W @ x (column layout)
        return jnp.asarray(wmat.T, compute_dtype)

    def w_row(wmat):   # keep (Cin, Cout) for y = x @ W (row layout)
        return jnp.asarray(wmat, compute_dtype)

    def b_col(bvec):   # (1, Cout) -> (Cout, 1), f32
        return jnp.asarray(bvec.reshape(-1, 1), jnp.float32)

    def b_row(bvec):   # keep (1, Cout), f32
        return jnp.asarray(bvec.reshape(1, -1), jnp.float32)

    weights = [w_col(wp1), b_col(bp1), w_col(wp2), b_col(bp2),   # f_pixel
               w_row(wo1), b_row(bo1), w_row(wo2), b_row(bo2),   # f_object
               w_col(wd),  b_col(bd),                            # f_down
               w_col(wu),  b_col(bu)]                            # f_up

    # Tile the pixel/query axis: bounds VMEM, restores pipelining, and gives
    # the megacore two parallel grid axes.  Only the tiny proxy-side K/V work
    # is recomputed per tile.
    tq = ((max(128, int(tile_q)) + 127) // 128) * 128
    hw128 = ((hw + 127) // 128) * 128
    tq = min(tq, hw128)
    hw_pad = ((hw + tq - 1) // tq) * tq
    if hw_pad != hw:
        x = jnp.pad(x, ((0, 0), (0, 0), (0, hw_pad - hw)))
    n_q_tiles = hw_pad // tq

    grid = (n, n_q_tiles)

    def const_spec(arr):
        return pl.BlockSpec(arr.shape, lambda b, q: (0,) * arr.ndim)

    in_specs = [
        pl.BlockSpec((None, c, tq), lambda b, q: (b, 0, q)),    # x tile   (C, TQ)
        pl.BlockSpec((None, c, m), lambda b, q: (b, 0, 0)),     # proxy    (C, M)
        pl.BlockSpec((None, m, c), lambda b, q: (b, 0, 0)),     # proxy    (M, C)
    ] + [const_spec(wb) for wb in weights]

    out_specs = pl.BlockSpec((None, c, tq), lambda b, q: (b, 0, q))

    out = pl.pallas_call(
        _oab_kernel,
        out_shape=jax.ShapeDtypeStruct((n, c, hw_pad), out_dtype),
        grid=grid,
        in_specs=in_specs,
        out_specs=out_specs,
        compiler_params=pltpu.CompilerParams(
            dimension_semantics=("parallel", "parallel"),
            vmem_limit_bytes=_vmem_limit_bytes()),
    )(x, p_cols, p_rows, *weights)

    # (N, C, HW) -> NCHW: pure reshape again (drop any pixel padding first).
    return out[:, :, :hw].reshape(n, c, h, w)


# ------------------------ deterministic parameter init --------------------- #
def _fold_conv_bn(key, c_in, c_out, eps=1e-5):
    """1x1 conv (no bias) + BatchNorm2d (inference, default init).

    Returns (W, b) with W: (c_in, c_out), b: (1, c_out) so that
    y = x @ W + b  ==  BN(Conv1x1(x)).
    """
    w = jax.random.normal(key, (c_in, c_out), jnp.float32) * 0.1
    gamma = jnp.ones((c_out,), jnp.float32)
    beta = jnp.zeros((c_out,), jnp.float32)
    mean = jnp.zeros((c_out,), jnp.float32)
    var = jnp.ones((c_out,), jnp.float32)
    scale = gamma / jnp.sqrt(var + eps)
    shift = beta - mean * scale
    return w * scale[None, :], shift[None, :]


def make_params(key, in_channels, key_channels):
    ks = jax.random.split(key, 6)
    return {
        "f_pixel": [_fold_conv_bn(ks[0], in_channels, key_channels),
                    _fold_conv_bn(ks[1], key_channels, key_channels)],
        "f_object": [_fold_conv_bn(ks[2], in_channels, key_channels),
                     _fold_conv_bn(ks[3], key_channels, key_channels)],
        "f_down": [_fold_conv_bn(ks[4], in_channels, key_channels)],
        "f_up": [_fold_conv_bn(ks[5], key_channels, in_channels)],
    }


# ---------------------------- pure-JAX reference ---------------------------- #
def reference_forward(x_nchw, proxy_nchw, params):
    n, c, h, w = x_nchw.shape
    m = proxy_nchw.shape[2] * proxy_nchw.shape[3]
    x = jnp.transpose(x_nchw, (0, 2, 3, 1)).reshape(n, h * w, c)
    p = jnp.transpose(proxy_nchw, (0, 2, 3, 1)).reshape(n, m, c)

    def dr(a, wb):
        return jnp.maximum(a @ wb[0] + wb[1], 0.0)

    q = dr(dr(x, params["f_pixel"][0]), params["f_pixel"][1])
    k = dr(dr(p, params["f_object"][0]), params["f_object"][1])
    v = dr(p, params["f_down"][0])
    kc = q.shape[-1]
    sim = jnp.einsum("nqk,nmk->nqm", q, k) * (kc ** -0.5)
    attn = jax.nn.softmax(sim, axis=-1)
    ctx = jnp.einsum("nqm,nmk->nqk", attn, v)
    out = dr(ctx, params["f_up"][0])
    return jnp.transpose(out.reshape(n, h, w, c), (0, 3, 1, 2))


# ----------------------------------- main ----------------------------------- #
if __name__ == "__main__":
    in_channels = 32
    key_channels = 16
    N, H, W = 2, 16, 16
    M = 8  # number of proxy (object-region) vectors; proxy is (N, C, M, 1)

    key = jax.random.PRNGKey(0)
    kx, kp, kw = jax.random.split(key, 3)
    x = jax.random.normal(kx, (N, in_channels, H, W), jnp.float32)
    proxy = jax.random.normal(kp, (N, in_channels, M, 1), jnp.float32)
    params = make_params(kw, in_channels, key_channels)

    # tile_q=128 exercises the (N, HW-tiles) grid even at this toy size.
    out = object_attention_block(x, proxy, params, tile_q=128)
    out = jax.block_until_ready(out)

    ref = reference_forward(x, proxy, params)
    assert out.shape == (N, in_channels, H, W)
    # bf16 MXU path with f32 softmax/accumulation: looser tolerance than pure f32.
    err = float(jnp.max(jnp.abs(out - ref)))
    assert jnp.allclose(out, ref, atol=3e-2, rtol=3e-2), (
        f"mismatch vs reference (max abs err {err})")

    print("KERNEL_OK")
</pallas_src>

<mosaic_0001>
module attributes {stable_mosaic.version = 11 : i64} {
  func.func @_oab_kernel(%arg0: i32, %arg1: i32, %arg2: memref<1x32x128xbf16, #tpu.memory_space<vmem>>, %arg3: memref<1x32x8xbf16, #tpu.memory_space<vmem>>, %arg4: memref<1x8x32xbf16, #tpu.memory_space<vmem>>, %arg5: memref<16x32xbf16, #tpu.memory_space<vmem>>, %arg6: memref<16x1xf32, #tpu.memory_space<vmem>>, %arg7: memref<16x16xbf16, #tpu.memory_space<vmem>>, %arg8: memref<16x1xf32, #tpu.memory_space<vmem>>, %arg9: memref<32x16xbf16, #tpu.memory_space<vmem>>, %arg10: memref<1x16xf32, #tpu.memory_space<vmem>>, %arg11: memref<16x16xbf16, #tpu.memory_space<vmem>>, %arg12: memref<1x16xf32, #tpu.memory_space<vmem>>, %arg13: memref<16x32xbf16, #tpu.memory_space<vmem>>, %arg14: memref<16x1xf32, #tpu.memory_space<vmem>>, %arg15: memref<32x16xbf16, #tpu.memory_space<vmem>>, %arg16: memref<32x1xf32, #tpu.memory_space<vmem>>, %arg17: memref<1x32x128xf32, #tpu.memory_space<vmem>>) attributes {dimension_semantics = [#tpu.dimension_semantics<parallel>, #tpu.dimension_semantics<parallel>], iteration_bounds = array<i64: 2, 2>, scalar_prefetch = 0 : i64, scratch_operands = 0 : i64, tpu.core_type = #tpu.core_type<tc>, window_params = [{transform_indices = @transform_0, window_bounds = array<i64: 1, 32, 128>}, {transform_indices = @transform_1, window_bounds = array<i64: 1, 32, 8>}, {transform_indices = @transform_2, window_bounds = array<i64: 1, 8, 32>}, {pipeline_mode = #tpu.pipeline_mode<synchronous>, transform_indices = @transform_3, window_bounds = array<i64: 16, 32>}, {pipeline_mode = #tpu.pipeline_mode<synchronous>, transform_indices = @transform_4, window_bounds = array<i64: 16, 1>}, {pipeline_mode = #tpu.pipeline_mode<synchronous>, transform_indices = @transform_5, window_bounds = array<i64: 16, 16>}, {pipeline_mode = #tpu.pipeline_mode<synchronous>, transform_indices = @transform_6, window_bounds = array<i64: 16, 1>}, {pipeline_mode = #tpu.pipeline_mode<synchronous>, transform_indices = @transform_7, window_bounds = array<i64: 32, 16>}, {pipeline_mode = #tpu.pipeline_mode<synchronous>, transform_indices = @transform_8, window_bounds = array<i64: 1, 16>}, {pipeline_mode = #tpu.pipeline_mode<synchronous>, transform_indices = @transform_9, window_bounds = array<i64: 16, 16>}, {pipeline_mode = #tpu.pipeline_mode<synchronous>, transform_indices = @transform_10, window_bounds = array<i64: 1, 16>}, {pipeline_mode = #tpu.pipeline_mode<synchronous>, transform_indices = @transform_11, window_bounds = array<i64: 16, 32>}, {pipeline_mode = #tpu.pipeline_mode<synchronous>, transform_indices = @transform_12, window_bounds = array<i64: 16, 1>}, {pipeline_mode = #tpu.pipeline_mode<synchronous>, transform_indices = @transform_13, window_bounds = array<i64: 32, 16>}, {pipeline_mode = #tpu.pipeline_mode<synchronous>, transform_indices = @transform_14, window_bounds = array<i64: 32, 1>}, {transform_indices = @transform_15, window_bounds = array<i64: 1, 32, 128>}]} {
    %c0 = arith.constant 0 : index
    %c0_0 = arith.constant 0 : index
    %c0_1 = arith.constant 0 : index
    %0 = vector.load %arg2[%c0, %c0_0, %c0_1] : memref<1x32x128xbf16, #tpu.memory_space<vmem>>, vector<1x32x128xbf16>
    %1 = vector.shape_cast %0 : vector<1x32x128xbf16> to vector<32x128xbf16>
    %c0_2 = arith.constant 0 : index
    %c0_3 = arith.constant 0 : index
    %c0_4 = arith.constant 0 : index
    %2 = vector.load %arg3[%c0_2, %c0_3, %c0_4] : memref<1x32x8xbf16, #tpu.memory_space<vmem>>, vector<1x32x8xbf16>
    %3 = vector.shape_cast %2 : vector<1x32x8xbf16> to vector<32x8xbf16>
    %c0_5 = arith.constant 0 : index
    %c0_6 = arith.constant 0 : index
    %c0_7 = arith.constant 0 : index
    %4 = vector.load %arg4[%c0_5, %c0_6, %c0_7] : memref<1x8x32xbf16, #tpu.memory_space<vmem>>, vector<1x8x32xbf16>
    %5 = vector.shape_cast %4 : vector<1x8x32xbf16> to vector<8x32xbf16>
    %c0_8 = arith.constant 0 : index
    %c0_9 = arith.constant 0 : index
    %6 = vector.load %arg5[%c0_8, %c0_9] : memref<16x32xbf16, #tpu.memory_space<vmem>>, vector<16x32xbf16>
    %cst = arith.constant dense<0.000000e+00> : vector<16x128xf32>
    %7 = tpu.matmul %6, %1, %cst {dimension_numbers = #tpu.dot_dimension_numbers<[1], [0], [0], [1], [0, 0, 1, 1], [], []>} : vector<16x32xbf16>, vector<32x128xbf16>, vector<16x128xf32> -> vector<16x128xf32>
    %c0_10 = arith.constant 0 : index
    %c0_11 = arith.constant 0 : index
    %8 = vector.load %arg6[%c0_10, %c0_11] : memref<16x1xf32, #tpu.memory_space<vmem>>, vector<16x1xf32>
    %9 = vector.broadcast %8 : vector<16x1xf32> to vector<16x128xf32>
    %10 = arith.addf %7, %9 : vector<16x128xf32>
    %cst_12 = arith.constant 0.000000e+00 : f32
    %11 = vector.broadcast %cst_12 : f32 to vector<16x128xf32>
    %12 = arith.maximumf %10, %11 : vector<16x128xf32>
    %13 = arith.truncf %12 : vector<16x128xf32> to vector<16x128xbf16>
    %c0_13 = arith.constant 0 : index
    %c0_14 = arith.constant 0 : index
    %14 = vector.load %arg7[%c0_13, %c0_14] : memref<16x16xbf16, #tpu.memory_space<vmem>>, vector<16x16xbf16>
    %cst_15 = arith.constant dense<0.000000e+00> : vector<16x128xf32>
    %15 = tpu.matmul %14, %13, %cst_15 {dimension_numbers = #tpu.dot_dimension_numbers<[1], [0], [0], [1], [0, 0, 1, 1], [], []>} : vector<16x16xbf16>, vector<16x128xbf16>, vector<16x128xf32> -> vector<16x128xf32>
    %c0_16 = arith.constant 0 : index
    %c0_17 = arith.constant 0 : index
    %16 = vector.load %arg8[%c0_16, %c0_17] : memref<16x1xf32, #tpu.memory_space<vmem>>, vector<16x1xf32>
    %17 = vector.broadcast %16 : vector<16x1xf32> to vector<16x128xf32>
    %18 = arith.addf %15, %17 : vector<16x128xf32>
    %cst_18 = arith.constant 0.000000e+00 : f32
    %19 = vector.broadcast %cst_18 : f32 to vector<16x128xf32>
    %20 = arith.maximumf %18, %19 : vector<16x128xf32>
    %c0_19 = arith.constant 0 : index
    %c0_20 = arith.constant 0 : index
    %21 = vector.load %arg9[%c0_19, %c0_20] : memref<32x16xbf16, #tpu.memory_space<vmem>>, vector<32x16xbf16>
    %cst_21 = arith.constant dense<0.000000e+00> : vector<8x16xf32>
    %22 = tpu.matmul %5, %21, %cst_21 {dimension_numbers = #tpu.dot_dimension_numbers<[1], [0], [0], [1], [0, 0, 1, 1], [], []>} : vector<8x32xbf16>, vector<32x16xbf16>, vector<8x16xf32> -> vector<8x16xf32>
    %c0_22 = arith.constant 0 : index
    %c0_23 = arith.constant 0 : index
    %23 = vector.load %arg10[%c0_22, %c0_23] : memref<1x16xf32, #tpu.memory_space<vmem>>, vector<1x16xf32>
    %24 = vector.broadcast %23 : vector<1x16xf32> to vector<8x16xf32>
    %25 = arith.addf %22, %24 : vector<8x16xf32>
    %cst_24 = arith.constant 0.000000e+00 : f32
    %26 = vector.broadcast %cst_24 : f32 to vector<8x16xf32>
    %27 = arith.maximumf %25, %26 : vector<8x16xf32>
    %28 = arith.truncf %27 : vector<8x16xf32> to vector<8x16xbf16>
    %c0_25 = arith.constant 0 : index
    %c0_26 = arith.constant 0 : index
    %29 = vector.load %arg11[%c0_25, %c0_26] : memref<16x16xbf16, #tpu.memory_space<vmem>>, vector<16x16xbf16>
    %cst_27 = arith.constant dense<0.000000e+00> : vector<8x16xf32>
    %30 = tpu.matmul %28, %29, %cst_27 {dimension_numbers = #tpu.dot_dimension_numbers<[1], [0], [0], [1], [0, 0, 1, 1], [], []>} : vector<8x16xbf16>, vector<16x16xbf16>, vector<8x16xf32> -> vector<8x16xf32>
    %c0_28 = arith.constant 0 : index
    %c0_29 = arith.constant 0 : index
    %31 = vector.load %arg12[%c0_28, %c0_29] : memref<1x16xf32, #tpu.memory_space<vmem>>, vector<1x16xf32>
    %32 = vector.broadcast %31 : vector<1x16xf32> to vector<8x16xf32>
    %33 = arith.addf %30, %32 : vector<8x16xf32>
    %cst_30 = arith.constant 0.000000e+00 : f32
    %34 = vector.broadcast %cst_30 : f32 to vector<8x16xf32>
    %35 = arith.maximumf %33, %34 : vector<8x16xf32>
    %c0_31 = arith.constant 0 : index
    %c0_32 = arith.constant 0 : index
    %36 = vector.load %arg13[%c0_31, %c0_32] : memref<16x32xbf16, #tpu.memory_space<vmem>>, vector<16x32xbf16>
    %cst_33 = arith.constant dense<0.000000e+00> : vector<16x8xf32>
    %37 = tpu.matmul %36, %3, %cst_33 {dimension_numbers = #tpu.dot_dimension_numbers<[1], [0], [0], [1], [0, 0, 1, 1], [], []>} : vector<16x32xbf16>, vector<32x8xbf16>, vector<16x8xf32> -> vector<16x8xf32>
    %c0_34 = arith.constant 0 : index
    %c0_35 = arith.constant 0 : index
    %38 = vector.load %arg14[%c0_34, %c0_35] : memref<16x1xf32, #tpu.memory_space<vmem>>, vector<16x1xf32>
    %39 = vector.broadcast %38 : vector<16x1xf32> to vector<16x8xf32>
    %40 = arith.addf %37, %39 : vector<16x8xf32>
    %cst_36 = arith.constant 0.000000e+00 : f32
    %41 = vector.broadcast %cst_36 : f32 to vector<16x8xf32>
    %42 = arith.maximumf %40, %41 : vector<16x8xf32>
    %43 = arith.truncf %35 : vector<8x16xf32> to vector<8x16xbf16>
    %44 = arith.truncf %20 : vector<16x128xf32> to vector<16x128xbf16>
    %cst_37 = arith.constant dense<0.000000e+00> : vector<8x128xf32>
    %45 = tpu.matmul %43, %44, %cst_37 {dimension_numbers = #tpu.dot_dimension_numbers<[1], [0], [0], [1], [0, 0, 1, 1], [], []>} : vector<8x16xbf16>, vector<16x128xbf16>, vector<8x128xf32> -> vector<8x128xf32>
    %cst_38 = arith.constant dense<0xFF800000> : vector<128xf32>
    %46 = vector.multi_reduction <maximumf>, %45, %cst_38 [0] : vector<8x128xf32> to vector<128xf32>
    %47 = vector.shape_cast %46 : vector<128xf32> to vector<1x128xf32>
    %48 = vector.broadcast %47 : vector<1x128xf32> to vector<8x128xf32>
    %49 = arith.subf %45, %48 : vector<8x128xf32>
    %50 = math.exp %49 : vector<8x128xf32>
    %cst_39 = arith.constant dense<0.000000e+00> : vector<128xf32>
    %51 = vector.multi_reduction <add>, %50, %cst_39 [0] : vector<8x128xf32> to vector<128xf32>
    %52 = vector.shape_cast %51 : vector<128xf32> to vector<1x128xf32>
    %53 = tpu.reciprocal %52 {approx = true} : vector<1x128xf32> -> vector<1x128xf32>
    %54 = vector.broadcast %53 : vector<1x128xf32> to vector<8x128xf32>
    %55 = arith.mulf %50, %54 : vector<8x128xf32>
    %56 = arith.truncf %42 : vector<16x8xf32> to vector<16x8xbf16>
    %57 = arith.truncf %55 : vector<8x128xf32> to vector<8x128xbf16>
    %cst_40 = arith.constant dense<0.000000e+00> : vector<16x128xf32>
    %58 = tpu.matmul %56, %57, %cst_40 {dimension_numbers = #tpu.dot_dimension_numbers<[1], [0], [0], [1], [0, 0, 1, 1], [], []>} : vector<16x8xbf16>, vector<8x128xbf16>, vector<16x128xf32> -> vector<16x128xf32>
    %59 = arith.truncf %58 : vector<16x128xf32> to vector<16x128xbf16>
    %c0_41 = arith.constant 0 : index
    %c0_42 = arith.constant 0 : index
    %60 = vector.load %arg15[%c0_41, %c0_42] : memref<32x16xbf16, #tpu.memory_space<vmem>>, vector<32x16xbf16>
    %cst_43 = arith.constant dense<0.000000e+00> : vector<32x128xf32>
    %61 = tpu.matmul %60, %59, %cst_43 {dimension_numbers = #tpu.dot_dimension_numbers<[1], [0], [0], [1], [0, 0, 1, 1], [], []>} : vector<32x16xbf16>, vector<16x128xbf16>, vector<32x128xf32> -> vector<32x128xf32>
    %c0_44 = arith.constant 0 : index
    %c0_45 = arith.constant 0 : index
    %62 = vector.load %arg16[%c0_44, %c0_45] : memref<32x1xf32, #tpu.memory_space<vmem>>, vector<32x1xf32>
    %63 = vector.broadcast %62 : vector<32x1xf32> to vector<32x128xf32>
    %64 = arith.addf %61, %63 : vector<32x128xf32>
    %cst_46 = arith.constant 0.000000e+00 : f32
    %65 = vector.broadcast %cst_46 : f32 to vector<32x128xf32>
    %66 = arith.maximumf %64, %65 : vector<32x128xf32>
    %c0_47 = arith.constant 0 : index
    %c0_48 = arith.constant 0 : index
    %c0_49 = arith.constant 0 : index
    %67 = vector.load %arg17[%c0_47, %c0_48, %c0_49] : memref<1x32x128xf32, #tpu.memory_space<vmem>>, vector<1x32x128xf32>
    %68 = vector.shape_cast %67 : vector<1x32x128xf32> to vector<32x128xf32>
    %69 = vector.shape_cast %66 : vector<32x128xf32> to vector<1x32x128xf32>
    tpu.vector_store %arg17[%c0_47, %c0_48, %c0_49], %69 {strides = array<i32>} : memref<1x32x128xf32, #tpu.memory_space<vmem>>, vector<1x32x128xf32>,
    return
  }
  func.func @transform_0(%arg0: i32, %arg1: i32) -> (i32, i32, i32) {
    %c0_i32 = arith.constant 0 : i32
    %c0_i32_0 = arith.constant 0 : i32
    return %arg0, %c0_i32, %arg1 : i32, i32, i32
  }
  func.func @transform_1(%arg0: i32, %arg1: i32) -> (i32, i32, i32) {
    %c0_i32 = arith.constant 0 : i32
    %c0_i32_0 = arith.constant 0 : i32
    %c0_i32_1 = arith.constant 0 : i32
    return %arg0, %c0_i32, %c0_i32_0 : i32, i32, i32
  }
  func.func @transform_2(%arg0: i32, %arg1: i32) -> (i32, i32, i32) {
    %c0_i32 = arith.constant 0 : i32
    %c0_i32_0 = arith.constant 0 : i32
    %c0_i32_1 = arith.constant 0 : i32
    return %arg0, %c0_i32, %c0_i32_0 : i32, i32, i32
  }
  func.func @transform_3(%arg0: i32, %arg1: i32) -> (i32, i32) {
    %c0_i32 = arith.constant 0 : i32
    %c0_i32_0 = arith.constant 0 : i32
    %c0_i32_1 = arith.constant 0 : i32
    return %c0_i32, %c0_i32_0 : i32, i32
  }
  func.func @transform_4(%arg0: i32, %arg1: i32) -> (i32, i32) {
    %c0_i32 = arith.constant 0 : i32
    %c0_i32_0 = arith.constant 0 : i32
    %c0_i32_1 = arith.constant 0 : i32
    return %c0_i32, %c0_i32_0 : i32, i32
  }
  func.func @transform_5(%arg0: i32, %arg1: i32) -> (i32, i32) {
    %c0_i32 = arith.constant 0 : i32
    %c0_i32_0 = arith.constant 0 : i32
    %c0_i32_1 = arith.constant 0 : i32
    return %c0_i32, %c0_i32_0 : i32, i32
  }
  func.func @transform_6(%arg0: i32, %arg1: i32) -> (i32, i32) {
    %c0_i32 = arith.constant 0 : i32
    %c0_i32_0 = arith.constant 0 : i32
    %c0_i32_1 = arith.constant 0 : i32
    return %c0_i32, %c0_i32_0 : i32, i32
  }
  func.func @transform_7(%arg0: i32, %arg1: i32) -> (i32, i32) {
    %c0_i32 = arith.constant 0 : i32
    %c0_i32_0 = arith.constant 0 : i32
    %c0_i32_1 = arith.constant 0 : i32
    return %c0_i32, %c0_i32_0 : i32, i32
  }
  func.func @transform_8(%arg0: i32, %arg1: i32) -> (i32, i32) {
    %c0_i32 = arith.constant 0 : i32
    %c0_i32_0 = arith.constant 0 : i32
    %c0_i32_1 = arith.constant 0 : i32
    return %c0_i32, %c0_i32_0 : i32, i32
  }
  func.func @transform_9(%arg0: i32, %arg1: i32) -> (i32, i32) {
    %c0_i32 = arith.constant 0 : i32
    %c0_i32_0 = arith.constant 0 : i32
    %c0_i32_1 = arith.constant 0 : i32
    return %c0_i32, %c0_i32_0 : i32, i32
  }
  func.func @transform_10(%arg0: i32, %arg1: i32) -> (i32, i32) {
    %c0_i32 = arith.constant 0 : i32
    %c0_i32_0 = arith.constant 0 : i32
    %c0_i32_1 = arith.constant 0 : i32
    return %c0_i32, %c0_i32_0 : i32, i32
  }
  func.func @transform_11(%arg0: i32, %arg1: i32) -> (i32, i32) {
    %c0_i32 = arith.constant 0 : i32
    %c0_i32_0 = arith.constant 0 : i32
    %c0_i32_1 = arith.constant 0 : i32
    return %c0_i32, %c0_i32_0 : i32, i32
  }
  func.func @transform_12(%arg0: i32, %arg1: i32) -> (i32, i32) {
    %c0_i32 = arith.constant 0 : i32
    %c0_i32_0 = arith.constant 0 : i32
    %c0_i32_1 = arith.constant 0 : i32
    return %c0_i32, %c0_i32_0 : i32, i32
  }
  func.func @transform_13(%arg0: i32, %arg1: i32) -> (i32, i32) {
    %c0_i32 = arith.constant 0 : i32
    %c0_i32_0 = arith.constant 0 : i32
    %c0_i32_1 = arith.constant 0 : i32
    return %c0_i32, %c0_i32_0 : i32, i32
  }
  func.func @transform_14(%arg0: i32, %arg1: i32) -> (i32, i32) {
    %c0_i32 = arith.constant 0 : i32
    %c0_i32_0 = arith.constant 0 : i32
    %c0_i32_1 = arith.constant 0 : i32
    return %c0_i32, %c0_i32_0 : i32, i32
  }
  func.func @transform_15(%arg0: i32, %arg1: i32) -> (i32, i32, i32) {
    %c0_i32 = arith.constant 0 : i32
    %c0_i32_0 = arith.constant 0 : i32
    return %arg0, %c0_i32, %arg1 : i32, i32, i32
  }
}

</mosaic_0001>

<bundles_post_ra>
// kernel: tpu_custom_call.1
= control target key start
LH: loop header
LB: loop body
LE: loop exit
PB: predicated region body
PF: predicated region fallthrough
CT: control target
= control target key end

     0   :  { %s1638_s0 = inlined_call_operand.vmem [shape: bf16[2,32,256], index: 0, kind: input, shape index: {}]   ;;  %s1639_s1 = inlined_call_operand.vmem [shape: bf16[2,32,8], index: 1, kind: input, shape index: {}]   ;;  %s1640_s2 = inlined_call_operand.vmem [shape: bf16[2,8,32], index: 2, kind: input, shape index: {}]   ;;  %s1641_s3 = inlined_call_operand.vmem [shape: bf16[16,32], index: 3, kind: input, shape index: {}]   ;;  %s1642_s4 = inlined_call_operand.vmem [shape: f32[16,1], index: 4, kind: input, shape index: {}]   ;;  %s1643_s5 = inlined_call_operand.vmem [shape: bf16[16,16], index: 5, kind: input, shape index: {}]   ;;  %s1644_s6 = inlined_call_operand.vmem [shape: f32[16,1], index: 6, kind: input, shape index: {}]   ;;  %s1645_s7 = inlined_call_operand.vmem [shape: bf16[32,16], index: 7, kind: input, shape index: {}]   ;;  %s1646_s8 = inlined_call_operand.vmem [shape: f32[1,16], index: 8, kind: input, shape index: {}]   ;;  %s1647_s9 = inlined_call_operand.vmem [shape: bf16[16,16], index: 9, kind: input, shape index: {}]   ;;  %s1648_s10 = inlined_call_operand.vmem [shape: f32[1,16], index: 10, kind: input, shape index: {}]   ;;  %s1649_s11 = inlined_call_operand.vmem [shape: bf16[16,32], index: 11, kind: input, shape index: {}]   ;;  %s1650_s12 = inlined_call_operand.vmem [shape: f32[16,1], index: 12, kind: input, shape index: {}]   ;;  %s1651_s13 = inlined_call_operand.vmem [shape: bf16[32,16], index: 13, kind: input, shape index: {}]   ;;  %s1652_s14 = inlined_call_operand.vmem [shape: f32[32,1], index: 14, kind: input, shape index: {}]   ;;  %s1653_s15 = inlined_call_operand.hbm [shape: f32[2,32,256], index: 15, kind: output, shape index: {}]  }
   0x1   :  { %1662 = sst [smem:[#allocation12_spill]] %s1638_s0 }
   0x2   :  { %1663 = sst [smem:[#allocation13_spill]] %s1639_s1 }
   0x3   :  { %1664 = sst [smem:[#allocation14_spill]] %s1640_s2 }
   0x4   :  { %1665 = sst [smem:[#allocation15_spill]] %s1641_s3 }
   0x5   :  { %1666 = sst [smem:[#allocation16_spill]] %s1642_s4 }
   0x6   :  { %1667 = sst [smem:[#allocation17_spill]] %s1643_s5 }
   0x7   :  { %1668 = sst [smem:[#allocation18_spill]] %s1648_s10 }
   0x8   :  { %1669 = sst [smem:[#allocation19_spill]] %s1651_s13 }
   0x9   :  { %1670 = sst [smem:[#allocation20_spill]] %s1653_s15 }
   0xa   :  { %20 = vsyncpa [#allocation4], 0 }
   0xb   :  { %22 = vsyncpa [#allocation4 + $0x1], 0  ;;  %s1428_s18 = smov 0   ;;  %s1430_s19 = smov 0  }
   0xc   :  { %s1432_s20 = smov 0   ;;  %s1434_s21 = smov 0  }
   0xd   :  { %s1436_s22 = smov 0   ;;  %s1438_s23 = smov 0  }
   0xe   :  { %s1440_s24 = smov 0   ;;  %s1442_s25 = smov 0  }
   0xf LB: > { %1671 = sst [smem:[#allocation6_spill]] %s1314_s18  ;;  %s1076_s26 = sadd.s32 4294967295, %s1342_s25   ;;  %s1342_s25 = sphi %s1442_s25, %s28_s25   ;;  %s1338_s24 = sphi %s1440_s24, %s1701_s24   ;;  %s1334_s23 = sphi %s1438_s23, %s1700_s23   ;;  %s1330_s22 = sphi %s1436_s22, %s1699_s22   ;;  %s1326_s21 = sphi %s1434_s21, %s1698_s21   ;;  %s1322_s20 = sphi %s1432_s20, %s1697_s20   ;;  %s1318_s19 = sphi %s1430_s19, %s1696_s19   ;;  %s1314_s18 = sphi %s1428_s18, %s1695_s18  }
  0x10   : > { %1672 = sst [smem:[#allocation7_spill]] %s1326_s21  ;;  %s1077_s27 = sadd.s32 4294967294, %s1342_s25  }
  0x11   : > { %s37_s28 = sadd.s32 1, %s1334_s23  ;;  %s40_s29 = sadd.s32 1, %s1338_s24 }
  0x12   : > { %p38_p0 = scmp.ge.s32.totalorder %s37_s28, 2  ;;  %p56_p1 = scmp.ne.s32.totalorder %s1322_s20, %s1318_s19 }
  0x13   : > { %p57_p2 = scmp.eq.s32.totalorder %s1342_s25, 0  ;;  %p392_p5 = scmp.eq.s32.totalorder %s1076_s26, 3 }
  0x14   : > { %s1703_s28 = smov (%p38_p0, %s37_s28), 0  ;;  %s1705_s29 = smov (!%p38_p0, %s40_s29), %s1338_s24 }
  0x15   : > { %1673 = sst [smem:[#allocation8_spill]] %s1703_s28  ;;  %s45_s30 = ssub.s32 %s1334_s23, %s1703_s28 }
  0x16   : > { %p1480_p3 = por %p57_p2, %p56_p1  ;;  %p42_p4 = scmp.ge.s32.totalorder %s1705_s29, 2 }
  0x17   : > { %p397_p6 = scmp.ne.s32.totalorder %s1318_s19, %s1314_s18  ;;  %p398_p7 = scmp.eq.s32.totalorder %s1077_s27, 3 }
  0x18   : > { %s1707_s29 = smov (%p42_p4, %s1705_s29), 0  ;;  %p1488_p8 = por %p392_p5, %p56_p1 }
  0x19   : > { %1675 = sst [smem:[#allocation9_spill]] %s1707_s29  ;;  %p1492_p9 = por %p398_p7, %p397_p6 }
  0x1a   : > { %s1676_s17 = scalar_select %p1488_p8, 1, 0 }
  0x1b   : > { %s1678_s15 = scalar_select %p1492_p9, 1, 0 }
  0x1c   : > { %1677 = sst [smem:[#allocation10_spill]] %s1676_s17  ;;  %s44_s28 = ssub.s32 %s1338_s24, %s1707_s29 }
  0x1d   : > { %1679 = sst [smem:[#allocation11_spill]] %s1678_s15  ;;  %s46_s21 = sor.u32 %s45_s30, %s44_s28 }
  0x1e   : > { %s49_s13 = sadd.s32 1, %s1322_s20  ;;  %p47_p10 = scmp.eq.s32.totalorder %s46_s21, 0 }
  0x1f   : > { %p1079_p11 = scmp.ge.s32.totalorder %s1342_s25, 4 }
  0x20   : > { %s1500_s10 = scalar_select %p47_p10, %s1322_s20, %s49_s13  }
  0x21   : > { %450 = sbr.rel (%p1079_p11) target bundleno = 52 (0x34), region = 64 }
  0x26   : > { %453 = sbr.rel (!%p1480_p3) target bundleno = 52 (0x34), region = 68  ;;  %s455_s26 = sand.u32 (%p1480_p3), 1, %s1322_s20  }
  0x27   : > { %s1081_s27 = sshll.u32 (%p1480_p3), %s1338_s24, 3  ;;  %s1080_s18 = sshll.u32 (%p1480_p3), %s455_s26, 4 }
  0x28   : > { %s459_s17 = sadd.s32 (%p1480_p3), %s1334_s23, %s1081_s27  ;;  %s1680_s0 = sld [smem:[#allocation12_spill]] (%p1480_p3) }
  0x29   : > { %s1082_s15 = sshll.u32 (%p1480_p3), %s459_s17, 2  ;;  %s457_s13 = scalar_lea.vmem (%p1480_p3), [#allocation2], %s1080_s18 }
  0x2e   : > { %s461_s21 = scalar_lea.vmem %s1680_s0, %s1082_s15 }
  0x2f   : > { %v478_v0 = vld [vmem:[%s461_s21] sm:$0xf]  ;;  %v480_v1 = vld [vmem:[%s461_s21 + $0x8] sm:$0xf]  ;;  %v482_v2 = vld [vmem:[%s461_s21 + $0x10] sm:$0xf] }
  0x30   : > { %479 = vst [vmem:[%s457_s13] sm:$0xf] %v478_v0  ;;  %v484_v3 = vld [vmem:[%s461_s21 + $0x18] sm:$0xf] }
  0x31   : > { %481 = vst [vmem:[%s457_s13 + $0x4] sm:$0xf] %v480_v1 }
  0x32   : > { %483 = vst [vmem:[%s457_s13 + $0x8] sm:$0xf] %v482_v2 }
  0x33   : > { %485 = vst [vmem:[%s457_s13 + $0xc] sm:$0xf] %v484_v3 }
  0x34 PF: > { %p1083_p12 = scmp.ge.s32.totalorder %s1342_s25, 1  ;;  %p531_p13 = scmp.lt.s32.totalorder %s1342_s25, 5 }
  0x36   : > { %p532_p0 = pnand %p1083_p12, %p531_p13 }
  0x37   : > { %s1681_s4 = sld [smem:[#allocation16_spill]] (!%p532_p0)  ;;  %s1517_s15 = sand.u32 (!%p532_p0), 1, %s1318_s19  }
  0x38   : > { %535 = sbr.rel (%p532_p0) target bundleno = 986 (0x3da), region = 117  ;;  %s1084_s18 = sshll.u32 (!%p532_p0), %s1517_s15, 4 }
  0x39   : > { %s540_s16 = scalar_lea.vmem (!%p532_p0), [#allocation2], %s1084_s18  ;;  %s1682_s3 = sld [smem:[#allocation15_spill]] (!%p532_p0) }
  0x3a   : > { %s1683_s5 = sld [smem:[#allocation17_spill]] (!%p532_p0)  ;;  %p594_p1 = scmp.lt.s32.totalorder (!%p532_p0), %s1330_s22, 1 }
  0x3b   : > { %s1684_s2 = sld [smem:[#allocation14_spill]] (!%p532_p0)  ;;  %s1147_s26 = sshll.u32 (!%p532_p0), %s1330_s22, 3 }
  0x3c   : > { %s1685_s1 = sld [smem:[#allocation13_spill]] (!%p532_p0) }
  0x3d   : > { %v615_v4 = vld [vmem:[%s1681_s4] sm:$0xff]  ;;  %v1344_v5 = vmov 0   ;;  %v1153_v6 = vld [vmem:[%s540_s16 + $0x8] sm:$0xff]  ;;  %vm644_vm0 = vcmask 261120   ;;  %vm684_vm1 = vcmask 130048   ;;  %s595_s18 = scalar_select %p594_p1, %s1330_s22, 1 }
  0x3e   : > { %1239 = vset.pattern.permute.xlu0 %v1344_v5  ;;  %1240 = vset.pattern.permute.xlu1 %v1344_v5  ;;  %v1152_v7 = vld [vmem:[%s540_s16] sm:$0xff]  ;;  %v616_v8 = vld [vmem:[%s1681_s4 + $0x8] sm:$0xff]  ;;  %v888_v11 = vld [vmem:[%s1652_s14 + $0x18] sm:$0xff]  ;;  %vm862_vm2 = vcmask 1043456   ;;  %vm858_vm3 = vcmask 64512   ;;  %s1687_s13 = sld [smem:[#allocation19_spill]] }
  0x3f   : > { %619 = vperm.xlu0 %1239, %v615_v4   ;;  %1241 = vset.pattern.permute.xlu2 %v1344_v5  ;;  %v1156_v9 = vld [vmem:[%s1682_s3] sm:$0xff]  ;;  %v668_v15 = vld [vmem:[%s1644_s6 + $0x8] sm:$0xff]  ;;  %s1088_s16 = sshll.u32 %s595_s18, 2  ;;  %s1151_s17 = sshll.u32 %s595_s18, 4  ;;  %v887_v49 = vld [vmem:[%s1652_s14 + $0x10] sm:$0xff] }
  0x40   : > { %654 = vmatpush.bf16.msra.mxu0 %v1153_v6  ;;  %v885_v10 = vld [vmem:[%s1652_s14] sm:$0xff]  ;;  %v1159_v22 = vld [vmem:[%s1645_s7 + $0x8] sm:$0xff]  ;;  %s1085_s18 = sshll.u32 %s1517_s15, 5  ;;  %s1689_s30 = sld [smem:[#allocation20_spill]] }
  0x41   : > { %v667_v12 = vld [vmem:[%s1644_s6] sm:$0xff]  ;;  %s602_s27 = scalar_lea.vmem %s1684_s2, %s1088_s16  ;;  %v886_v28 = vld [vmem:[%s1652_s14 + $0x8] sm:$0xff]  ;;  %s1688_s16 = sld [smem:[#allocation7_spill]] }
  0x42   : > { %671 = vperm.xlu1 %1240, %v667_v12   ;;  %v1157_v24 = vld [vmem:[%s1683_s5] sm:$0xff]  ;;  %s598_s28 = scalar_lea.vmem %s1685_s1, %s1151_s17  ;;  %v774_v48 = vld [vmem:[%s1650_s12 + $0x8] sm:$0xff]  ;;  %s593_s17 = scalar_lea.vmem [#allocation3], %s1085_s18 }
  0x43   : > { %v1158_v25 = vld [vmem:[%s1645_s7] sm:$0xff]  ;;  %v1155_v44 = vld [vmem:[%s598_s28 + $0x8] sm:$0xff]  ;;  %s966_s18 = sshll.u32 %s593_s17, 4  ;;  %s953_s22 = scalar_lea.sflag [#allocation4], %s1517_s15  ;;  %s967_s18 = int_to_ptr.vmem [resolvable:$true] %s966_s18 }
  0x44   : > { %655 = vmatpush.bf16.msra.mxu0 %v1152_v7  ;;  %v612_v26 = vld [vmem:[%s602_s27] sm:$0xf] }
  0x45   : > { %v1160_v27 = vld [vmem:[%s1647_s9] sm:$0xff] }
  0x46   : > { %764 = vmatpush.bf16.msra.mxu3 %v1160_v27  ;;  %v1242_v38 = vld [vmem:[%s1646_s8] ss:$0 sm:$0xff]  ;;  %s1268_s0 = scalar_lea.hbm %s1689_s30, 128 }
  0x47   : > { %624 = vperm.xlu0 %1239, %v616_v8   ;;  %1101 = vmatmul.msk.bf16.vlgmr.msra.gmra.mxu0 %vm644_vm0, %v1156_v9  ;;  %v773_v45 = vld [vmem:[%s1650_s12] sm:$0xff]  ;;  %s963_s27 = sadd.s32 %s1688_s16, %s1147_s26 }
  0x48   : > { %v1154_v46 = vld [vmem:[%s598_s28] sm:$0xff]  ;;  %777 = vperm.xlu2 %1241, %v773_v45   ;;  %s1686_s28 = sld [smem:[#allocation18_spill]] }
  0x49   : > { %v1161_v47 = vld [vmem:[%s1649_s11] sm:$0xff] }
  0x4a   : > { %676 = vperm.xlu1 %1240, %v668_v15  }
  0x4e   : > { %v1243_v50 = vld [vmem:[%s1686_s28] ss:$0 sm:$0xff]  ;;  %s1148_s28 = sshll.u32 %s963_s27, 3 }
  0x4f   : > { %891 = vperm.xlu0 %1239, %v885_v10   ;;  %s965_s29 = scalar_lea.hbm %s1689_s30, %s1148_s28 }
  0x50   : > { %782 = vperm.xlu2 %1241, %v774_v48   ;;  %s968_s2 = sshll.u32 %s965_s29, 4  ;;  %s969_s2 = int_to_ptr.hbm [resolvable:$true] %s968_s2 }
  0x51   : > { %s1262_s16 = sshra.s32 %s969_s2, 4  ;;  %s1263_s16 = int_to_ptr.hbm [resolvable:$true] %s1262_s16 }
  0x52   : > { %896 = vperm.xlu1 %1240, %v886_v28   ;;  %s1264_s26 = scalar_lea.hbm %s1263_s16, 32  ;;  %p1269_p5 = scmp.lt.s32.totalorder %s1263_s16, %s1689_s30 }
  0x53   : > { %p1265_p2 = scmp.ne.s32.totalorder %s1263_s16, %s1264_s26  ;;  %p1270_p6 = scmp.lt.s32.totalorder %s1268_s0, %s1264_s26 }
  0x55   : > { %p1266_p3 = pnand %p1265_p2, %p1488_p8  ;;  %p1271_p7 = por %p1270_p6, %p1269_p5 }
  0x57   : > { %906 = vperm.xlu0 %1239, %v888_v11   ;;  %p1267_p4 = pneg %p1266_p3 }
  0x58   : > { %901 = vperm.xlu2 %1241, %v887_v49  }
  0x59   : > { %p1272_p10 = pnand %p1271_p7, %p1267_p4 }
  0xa2   : > { %v778_v7 = vpop.permute.xlu2 %777 }
  0xaa   : > { %v783_v12 = vpop.permute.xlu2 %782 }
  0xb1   : > { %v620_v13 = vpop.permute.xlu0 %619 }
  0xb4   : > { %v672_v29 = vpop.permute.xlu1 %671 }
  0xb9   : > { %v625_v17 = vpop.permute.xlu0 %624 }
  0xbc   : > { %v677_v31 = vpop.permute.xlu1 %676 }
  0xc1   : > { %v892_v27 = vpop.permute.xlu0 %891 }
  0xc4   : > { %v657_v14 = vpop.f32.mrf.mxu0 }
  0xc5   : > { %v658_v16 = vadd.f32 %v657_v14, %v620_v13 }
  0xc7   : > { %v662_v20 = vmax.f32 %v658_v16, 0.0 }
  0xcc   : > { %v659_v18 = vpop.f32.mrf.mxu0 }
  0xcd   : > { %v660_v19 = vadd.f32 %v659_v18, %v625_v17 }
  0xcf   : > { %v663_v21 = vmax.f32 %v660_v19, 0.0 }
  0xd1   : > { %v664_v23 = vpack.c.bf16 %v663_v21, %v662_v20 }
  0xd3   : > { %695 = vmatpush.bf16.msra.mxu1 %v664_v23 }
  0xd6   : > { %1106 = vmatmul.msk.bf16.vlgmr.msra.gmra.mxu1 %vm684_vm1, %v1157_v24 }
  0xd7   : > { %733 = vmatpush.bf16.msrb.mxu1 %v1159_v22 }
  0xdb   : > { %734 = vmatpush.bf16.msrb.mxu1 %v1158_v25  ;;  %v1162_v25 = vld [vmem:[%s1687_s13] sm:$0xff] }
  0xdf   : > { %811 = vmatpush.bf16.msra.mxu1 %v1155_v44 }
  0xe3   : > { %812 = vmatpush.bf16.msra.mxu1 %v1154_v46 }
  0xe6   : > { %1115 = vmatmul.msk.bf16.vlgmr.msrb.gmra.mxu1 %vm644_vm0, %v612_v26  ;;  %v1163_v26 = vld [vmem:[%s1687_s13 + $0x8] sm:$0xff] }
  0xf6   : > { %1133 = vmatmul.msk.bf16.vlgmr.msra.gmra.mxu1 %vm644_vm0, %v1161_v47 }
 0x153   : > { %v697_v30 = vpop.f32.mrf.mxu1 }
 0x154   : > { %v698_v32 = vadd.f32 %v697_v30, %v672_v29 }
 0x156   : > { %v702_v35 = vmax.f32 %v698_v32, 0.0 }
 0x15b   : > { %v699_v33 = vpop.f32.mrf.mxu1 }
 0x15c   : > { %v700_v34 = vadd.f32 %v699_v33, %v677_v31  ;;  %v897_v31 = vpop.permute.xlu1 %896 }
 0x15e   : > { %v703_v36 = vmax.f32 %v700_v34, 0.0 }
 0x160   : > { %v822_v37 = vpack.c.bf16 %v703_v36, %v702_v35  ;;  %v902_v35 = vpop.permute.xlu2 %901 }
 0x162   : > { %833 = vmatpush.bf16.msrb.mxu3 %v822_v37 }
 0x163   : > { %v736_v39 = vpop.f32.mrf.mxu1 }
 0x164   : > { %v737_v40 = vadd.f32 %v1242_v38, %v736_v39  ;;  %v907_v39 = vpop.permute.xlu0 %906 }
 0x166   : > { %v740_v41 = vmax.f32 %v737_v40, 0.0 }
 0x168   : > { %v741_v42 = vpack.c.bf16 %v740_v41, %v740_v41 }
 0x16a   : > { %1120 = vmatmul.msk.bf16.vlgmr.msra.gmra.mxu3 %vm684_vm1, %v741_v42 }
 0x16b   : > { %v738_v43 = vpop.f32.mrf.mxu1 }
 0x173   : > { %v814_v5 = vpop.f32.mrf.mxu1 }
 0x174   : > { %v815_v13 = vadd.f32 %v814_v5, %v778_v7 }
 0x176   : > { %v819_v17 = vmax.f32 %v815_v13, 0.0 }
 0x17b   : > { %v816_v11 = vpop.f32.mrf.mxu1 }
 0x17c   : > { %v817_v14 = vadd.f32 %v816_v11, %v783_v12 }
 0x17e   : > { %v820_v18 = vmax.f32 %v817_v14, 0.0 }
 0x180   : > { %v856_v21 = vpack.c.bf16 %v820_v18, %v819_v17 }
 0x1ed   : > { %v766_v51 = vpop.f32.mrf.mxu3 }
 0x1ee   : > { %v767_v52 = vadd.f32 %v1243_v50, %v766_v51 }
 0x1f0   : > { %v770_v53 = vmax.f32 %v767_v52, 0.0 }
 0x1f2   : > { %v821_v54 = vpack.c.bf16 %v770_v53, %v770_v53 }
 0x1f4   : > { %1134 = vmatmul.msk.bf16.vlgmr.msrb.gmra.mxu3 %vm684_vm1, %v821_v54 }
 0x1f5   : > { %v768_v55 = vpop.f32.mrf.mxu3 }
 0x277   : > { %v835_v56 = vpop.f32.mrf.mxu3 }
 0x278   : > { %v839_v57 = vrot.slane %v835_v56, 4 }
 0x27a   : > { %v840_v58 = vmax.f32 %v835_v56, %v839_v57 }
 0x27c   : > { %v841_v59 = vrot.slane %v840_v58, 2 }
 0x27e   : > { %v842_v60 = vmax.f32 %v840_v58, %v841_v59 }
 0x27f   : > { %v837_v61 = vpop.f32.mrf.mxu3 }
 0x280   : > { %v843_v62 = vrot.slane %v842_v60, 1 }
 0x282   : > { %v844_v63 = vmax.f32 %v842_v60, %v843_v62 }
 0x284   : > { %v845_v0 = vsub.f32 %v835_v56, %v844_v63 }
 0x286   : > { %v846_v1 = vmul.f32 1.442695, %v845_v0 }
 0x288   : > { %1244 = vpow2.f32 %v846_v1 }
 0x28e   : > { %v1245_v2 = vpop.eup %1244 }
 0x28f   : > { %v848_v3 = vrot.slane %v1245_v2, 4 }
 0x291   : > { %v849_v4 = vadd.f32 %v1245_v2, %v848_v3 }
 0x293   : > { %v850_v6 = vrot.slane %v849_v4, 2 }
 0x295   : > { %v851_v8 = vadd.f32 %v850_v6, %v849_v4 }
 0x297   : > { %v852_v9 = vrot.slane %v851_v8, 1 }
 0x299   : > { %v853_v10 = vadd.f32 %v852_v9, %v851_v8 }
 0x29b   : > { %1246 = vrcp.f32 %v853_v10 }
 0x2a1   : > { %v1247_v15 = vpop.eup %1246 }
 0x2a2   : > { %v855_v16 = vmul.f32 %v1247_v15, %v1245_v2 }
 0x2a4   : > { %v857_v19 = vpack.c.bf16 %v855_v16, %v855_v16 }
 0x2a6   : > { %v864_v20 = vsel %vm862_vm2, %v857_v19, 0 }
 0x2a7   : > { %873 = vmatpush.bf16.msrb.mxu0 %v864_v20 }
 0x2aa   : > { %1135 = vmatmul.msk.bf16.vlgmr.msrb.gmra.mxu0 %vm858_vm3, %v856_v21 }
 0x327   : > { %v875_v22 = vpop.f32.mrf.mxu0 }
 0x32f   : > { %v877_v23 = vpop.f32.mrf.mxu0 }
 0x330   : > { %v880_v24 = vpack.c.bf16 %v877_v23, %v875_v22 }
 0x332   : > { %932 = vmatpush.bf16.msra.mxu2 %v880_v24 }
 0x335   : > { %1144 = vmatmul.msk.bf16.vlgmr.msra.gmra.mxu2 %vm684_vm1, %v1162_v25 }
 0x345   : > { %1145 = vmatmul.msk.bf16.gmra.mxu2 %vm684_vm1, %v1163_v26 }
 0x3b8   : > { %v934_v28 = vpop.f32.mrf.mxu2 }
 0x3b9   : > { %v935_v29 = vadd.f32 %v934_v28, %v892_v27 }
 0x3bb   : > { %v944_v30 = vmax.f32 %v935_v29, 0.0 }
 0x3bd   : > { %948 = vst [vmem:[%s593_s17] sm:$0xff] %v944_v30 }
 0x3c0   : > { %v936_v32 = vpop.f32.mrf.mxu2 }
 0x3c1   : > { %v937_v33 = vadd.f32 %v936_v32, %v897_v31 }
 0x3c3   : > { %v945_v34 = vmax.f32 %v937_v33, 0.0 }
 0x3c5   : > { %949 = vst [vmem:[%s593_s17 + $0x8] sm:$0xff] %v945_v34 }
 0x3c8   : > { %v939_v36 = vpop.f32.mrf.mxu2 }
 0x3c9   : > { %v940_v37 = vadd.f32 %v939_v36, %v902_v35 }
 0x3cb   : > { %v946_v38 = vmax.f32 %v940_v37, 0.0 }
 0x3cd   : > { %950 = vst [vmem:[%s593_s17 + $0x10] sm:$0xff] %v946_v38 }
 0x3d0   : > { %v941_v40 = vpop.f32.mrf.mxu2 }
 0x3d1   : > { %v942_v41 = vadd.f32 %v941_v40, %v907_v39 }
 0x3d3   : > { %v947_v42 = vmax.f32 %v942_v41, 0.0 }
 0x3d5   : > { %951 = vst [vmem:[%s593_s17 + $0x18] sm:$0xff] %v947_v42 }
 0x3d6   : > { %1275 = shalt.err (!%p1272_p10)
}
 0x3d7   : > { %s1345_s15 = smov 128   ;;  %s1346_s17 = smov 256  }
 0x3d8   : > { %s1347_s3 = smov 8  }
 0x3d9   : > { %1164 = dma.vmem_to_hbm [thread:$0]  (%p1488_p8), %s967_s18, 512, %s969_s2, %s953_s22, %s1345_s15, %s1346_s17, %s1347_s3  }
 0x3da PF: > { %s1691_s4 = sld [smem:[#allocation6_spill]]  ;;  %p1170_p11 = scmp.ge.s32.totalorder %s1342_s25, 2 }
 0x3dc   : > { %p1167_p12 = pnand %p1170_p11, %p1492_p9 }
 0x3de   : > { %p1168_p13 = pneg %p1167_p12 }
 0x3e0   : > { %s983_s27 = sand.u32 1, %s1691_s4  }
 0x3e1   : > { %s984_s16 = scalar_lea.sflag [#allocation4], %s983_s27 }
 0x3e2   : > { %1309 = dma.done.wait (%p1168_p13), %s984_s16, 512  }
 0x3e3   : > { %1311 = vsyncadd (%p1168_p13), %s984_s16, 4294966784  ;;  %s28_s25 = sadd.s32 1, %s1342_s25   ;;  %s1693_s1 = sld [smem:[#allocation8_spill]] }
 0x3e4   : > { %p25_p0 = scmp.ge.s32.totalorder %s28_s25, 6   ;;  %s1694_s2 = sld [smem:[#allocation9_spill]] }
 0x3e5   : > { %s1695_s18 = smov %s1318_s19  ;;  %s1696_s19 = smov %s1322_s20 }
 0x3e6   : > { %s1697_s20 = smov %s1500_s10  ;;  %s1698_s21 = smov %s1334_s23 }
 0x3e7   : > { %s1699_s22 = smov %s1338_s24  ;;  %27 = sbr.rel (!%p25_p0) target bundleno = 15 (0xf), region = 167 }
 0x3e9   : > { %s1700_s23 = smov %s1693_s1 }
 0x3ea   : > { %s1701_s24 = smov %s1694_s2 }
 0x3ec   :  { %990 = vsyncpa [#allocation4], 1 }
 0x3ed   :  { %992 = vsyncpa [#allocation4 + $0x1], 1 }

</bundles_post_ra>
